<compile_context>
chip_gen: v7x
topology: tpu7x:2x2x1
jax: 0.10.0
libtpu: 0.0.40
codegen_flags: <defaults>
</compile_context>

<pallas_src>
import functools

import jax
import jax.numpy as jnp
from jax.experimental import pallas as pl
from jax.experimental.pallas import tpu as pltpu


def _dwpw_kernel(x_ref, dww_ref, dwb_ref, pwt_ref, pwb_ref, m_ref,
                 o_ref, xpad_ref, *, H, W, C, CO, P):
    """One batch element per grid step.

    x_ref   : (1, C, H*W)      flattened NCHW input tile
    dww_ref : (C, 9)           depthwise 3x3 weights * BN scale, tap-major
    dwb_ref : (C, 1)           folded BN bias (depthwise branch)
    pwt_ref : (CO, C)          (pointwise weight * BN scale) transposed
    pwb_ref : (CO, 1)          folded BN bias (pointwise branch)
    m_ref   : (2, H*W)         column masks: row0 -> ow=-1 valid, row1 -> ow=+1
    o_ref   : (1, CO, H*W)
    xpad_ref: (C, H*W + 2*P)   zero-edged staging scratch (P >= W+1)
    """
    HW = H * W

    # Stage the image with zero edges: xpad = [0_P | x | 0_P].
    xpad_ref[:, :P] = jnp.zeros((C, P), jnp.float32)
    xpad_ref[:, P + HW:] = jnp.zeros((C, P), jnp.float32)
    xpad_ref[:, P:P + HW] = x_ref[0]

    # Depthwise 3x3 conv as 9 zero-filled flat shifts (lane-dense VPU work).
    # acc[c, h*W+w] = sum_{oh,ow} x[c, h+oh, w+ow] * k[c, oh+1, ow+1]
    acc = None
    for ow in (-1, 0, 1):
        part = None
        for oh in (-1, 0, 1):
            tap = (oh + 1) * 3 + (ow + 1)
            s = oh * W + ow
            v = xpad_ref[:, P + s:P + s + HW] * dww_ref[:, tap:tap + 1]
            part = v if part is None else part + v
        # Kill column wrap-around for the horizontal taps.
        if ow == -1:
            part = part * m_ref[0:1, :]
        elif ow == 1:
            part = part * m_ref[1:2, :]
        acc = part if acc is None else acc + part

    # Folded BatchNorm bias + SiLU (scale already folded into the weights).
    y = acc + dwb_ref[...]
    y = y * jax.nn.sigmoid(y)

    # Pointwise 1x1 conv: (CO, C) @ (C, HW) on the MXU, then bias + SiLU.
    z = jnp.dot(pwt_ref[...], y, preferred_element_type=jnp.float32)
    z = z + pwb_ref[...]
    z = z * jax.nn.sigmoid(z)

    o_ref[0] = z  # (CO, HW): lane-dense store, NCHW-flat layout.


def depthwise_conv_forward(x_nchw, params, *, K=3):
    """NCHW in -> NCHW out.  Matches DepthWiseConv.forward (eval-mode BN)."""
    assert K == 3, "DepthWiseConv hard-codes padding=1; this kernel supports K=3."
    N, C, H, W = x_nchw.shape
    CO = params["pw_w"].shape[1]
    HW = H * W
    P = int(pl.cdiv(W + 1, 128)) * 128   # zero-edge width, lane-tile aligned

    f32 = jnp.float32
    # Free reshape (contiguous dims merge) -- no transpose / pad HBM passes.
    x_flat = x_nchw.reshape(N, C, HW).astype(f32)

    # Fold BN scale into the conv weights (tiny wrapper-side tensors).
    dww = (params["dw_w"] * params["dw_scale"][None, None, :])           # (K,K,C)
    dww = dww.transpose(2, 0, 1).reshape(C, K * K).astype(f32)           # (C, 9)
    dwb = params["dw_bias"].reshape(C, 1).astype(f32)
    pwt = (params["pw_w"] * params["pw_scale"][None, :]).T.astype(f32)   # (CO, C)
    pwb = params["pw_bias"].reshape(CO, 1).astype(f32)

    # Column-validity masks for the +/-1 horizontal taps (kill row wrap-around).
    col = jnp.arange(HW, dtype=jnp.int32) % W
    masks = jnp.stack([(col != 0), (col != W - 1)]).astype(f32)          # (2, HW)

    kernel = functools.partial(_dwpw_kernel, H=H, W=W, C=C, CO=CO, P=P)

    out_flat = pl.pallas_call(
        kernel,
        out_shape=jax.ShapeDtypeStruct((N, CO, HW), f32),
        grid_spec=pltpu.PrefetchScalarGridSpec(
            num_scalar_prefetch=0,
            grid=(N,),
            in_specs=[
                pl.BlockSpec((1, C, HW), lambda n: (n, 0, 0)),
                pl.BlockSpec((C, K * K), lambda n: (0, 0)),
                pl.BlockSpec((C, 1), lambda n: (0, 0)),
                pl.BlockSpec((CO, C), lambda n: (0, 0)),
                pl.BlockSpec((CO, 1), lambda n: (0, 0)),
                pl.BlockSpec((2, HW), lambda n: (0, 0)),
            ],
            out_specs=pl.BlockSpec((1, CO, HW), lambda n: (n, 0, 0)),
            scratch_shapes=[pltpu.VMEM((C, HW + 2 * P), f32)],
        ),
        compiler_params=pltpu.CompilerParams(
            dimension_semantics=("parallel",)),
    )(x_flat, dww, dwb, pwt, pwb, masks)

    return out_flat.reshape(N, CO, H, W)   # free reshape back to NCHW


def make_params(key, C, CO, K=3, eps=1e-5):
    """Deterministic synthetic params. BatchNorm (eval mode) is folded into
    per-channel scale/bias: scale = gamma / sqrt(var + eps),
    bias = beta - mean * scale."""
    ks = jax.random.split(key, 8)
    dw_w = jax.random.normal(ks[0], (K, K, C), jnp.float32) * 0.2
    pw_w = jax.random.normal(ks[1], (C, CO), jnp.float32) * 0.2

    dw_gamma = 1.0 + 0.1 * jax.random.normal(ks[2], (C,), jnp.float32)
    dw_beta = 0.1 * jax.random.normal(ks[3], (C,), jnp.float32)
    dw_mean = 0.1 * jax.random.normal(ks[4], (C,), jnp.float32)
    dw_var = jnp.abs(1.0 + 0.1 * jax.random.normal(ks[5], (C,), jnp.float32))

    pw_gamma = 1.0 + 0.1 * jax.random.normal(ks[6], (CO,), jnp.float32)
    pw_beta = 0.1 * jax.random.normal(ks[7], (CO,), jnp.float32)
    pw_mean = jnp.zeros((CO,), jnp.float32)
    pw_var = jnp.ones((CO,), jnp.float32)

    dw_scale = dw_gamma / jnp.sqrt(dw_var + eps)
    dw_bias = dw_beta - dw_mean * dw_scale
    pw_scale = pw_gamma / jnp.sqrt(pw_var + eps)
    pw_bias = pw_beta - pw_mean * pw_scale

    # TODO(synk): training-mode BatchNorm (batch statistics) not implemented;
    # eval-mode running stats are folded into scale/bias above.
    return dict(dw_w=dw_w, dw_scale=dw_scale, dw_bias=dw_bias,
                pw_w=pw_w, pw_scale=pw_scale, pw_bias=pw_bias)


def _reference(x_nchw, params, K=3):
    """Pure-JAX reference (lax conv) for correctness check."""
    N, C, H, W = x_nchw.shape
    x = jnp.transpose(x_nchw, (0, 2, 3, 1)).astype(jnp.float32)
    w = params["dw_w"].reshape(K, K, 1, C)
    y = jax.lax.conv_general_dilated(
        x, w, window_strides=(1, 1), padding=[(1, 1), (1, 1)],
        dimension_numbers=("NHWC", "HWIO", "NHWC"), feature_group_count=C)
    y = y * params["dw_scale"] + params["dw_bias"]
    y = jax.nn.silu(y)
    y2 = jnp.einsum("nhwc,cd->nhwd", y, params["pw_w"])
    y2 = y2 * params["pw_scale"] + params["pw_bias"]
    y2 = jax.nn.silu(y2)
    return jnp.transpose(y2, (0, 3, 1, 2))


if __name__ == "__main__":
    key = jax.random.PRNGKey(0)
    k_x, k_p = jax.random.split(key)

    N, C, H, W = 2, 4, 16, 16   # NCHW, PyTorch convention
    CO, K = 8, 3                # DepthWiseConv(in_channel=4, out_channel=8, kernel=3)

    x = jax.random.normal(k_x, (N, C, H, W), jnp.float32)
    params = make_params(k_p, C, CO, K)

    out = depthwise_conv_forward(x, params, K=K)
    out = jax.block_until_ready(out)

    ref = _reference(x, params, K)
    assert out.shape == (N, CO, H, W), out.shape
    assert jnp.allclose(out, ref, atol=1e-4, rtol=1e-4), \
        float(jnp.max(jnp.abs(out - ref)))

    print("KERNEL_OK")
</pallas_src>

<mosaic_0001>
module attributes {stable_mosaic.version = 11 : i64} {
  func.func @_dwpw_kernel(%arg0: i32, %arg1: memref<1x4x256xf32, #tpu.memory_space<vmem>>, %arg2: memref<4x9xf32, #tpu.memory_space<vmem>>, %arg3: memref<4x1xf32, #tpu.memory_space<vmem>>, %arg4: memref<8x4xf32, #tpu.memory_space<vmem>>, %arg5: memref<8x1xf32, #tpu.memory_space<vmem>>, %arg6: memref<2x256xf32, #tpu.memory_space<vmem>>, %arg7: memref<1x8x256xf32, #tpu.memory_space<vmem>>, %arg8: memref<4x512xf32, #tpu.memory_space<vmem>>) attributes {dimension_semantics = [#tpu.dimension_semantics<parallel>], iteration_bounds = array<i64: 2>, scalar_prefetch = 0 : i64, scratch_operands = 1 : i64, tpu.core_type = #tpu.core_type<tc>, window_params = [{transform_indices = @transform_0, window_bounds = array<i64: 1, 4, 256>}, {pipeline_mode = #tpu.pipeline_mode<synchronous>, transform_indices = @transform_1, window_bounds = array<i64: 4, 9>}, {pipeline_mode = #tpu.pipeline_mode<synchronous>, transform_indices = @transform_2, window_bounds = array<i64: 4, 1>}, {pipeline_mode = #tpu.pipeline_mode<synchronous>, transform_indices = @transform_3, window_bounds = array<i64: 8, 4>}, {pipeline_mode = #tpu.pipeline_mode<synchronous>, transform_indices = @transform_4, window_bounds = array<i64: 8, 1>}, {pipeline_mode = #tpu.pipeline_mode<synchronous>, transform_indices = @transform_5, window_bounds = array<i64: 2, 256>}, {transform_indices = @transform_6, window_bounds = array<i64: 1, 8, 256>}]} {
    %cst = arith.constant 0.000000e+00 : f32
    %0 = vector.broadcast %cst : f32 to vector<4x128xf32>
    %c0 = arith.constant 0 : index
    %c0_0 = arith.constant 0 : index
    %1 = vector.load %arg8[%c0, %c0_0] : memref<4x512xf32, #tpu.memory_space<vmem>>, vector<4x128xf32>
    tpu.vector_store %arg8[%c0, %c0_0], %0 {strides = array<i32>} : memref<4x512xf32, #tpu.memory_space<vmem>>, vector<4x128xf32>,
    %cst_1 = arith.constant 0.000000e+00 : f32
    %2 = vector.broadcast %cst_1 : f32 to vector<4x128xf32>
    %c0_2 = arith.constant 0 : index
    %c384 = arith.constant 384 : index
    %3 = vector.load %arg8[%c0_2, %c384] : memref<4x512xf32, #tpu.memory_space<vmem>>, vector<4x128xf32>
    tpu.vector_store %arg8[%c0_2, %c384], %2 {strides = array<i32>} : memref<4x512xf32, #tpu.memory_space<vmem>>, vector<4x128xf32>,
    %c0_3 = arith.constant 0 : index
    %c0_4 = arith.constant 0 : index
    %c0_5 = arith.constant 0 : index
    %4 = vector.load %arg1[%c0_3, %c0_4, %c0_5] : memref<1x4x256xf32, #tpu.memory_space<vmem>>, vector<1x4x256xf32>
    %5 = vector.shape_cast %4 : vector<1x4x256xf32> to vector<4x256xf32>
    %c0_6 = arith.constant 0 : index
    %c128 = arith.constant 128 : index
    %6 = vector.load %arg8[%c0_6, %c128] : memref<4x512xf32, #tpu.memory_space<vmem>>, vector<4x256xf32>
    tpu.vector_store %arg8[%c0_6, %c128], %5 {strides = array<i32>} : memref<4x512xf32, #tpu.memory_space<vmem>>, vector<4x256xf32>,
    %c0_7 = arith.constant 0 : index
    %c111 = arith.constant 111 : index
    %7 = vector.load %arg8[%c0_7, %c111] : memref<4x512xf32, #tpu.memory_space<vmem>>, vector<4x256xf32>
    %c0_8 = arith.constant 0 : index
    %c0_9 = arith.constant 0 : index
    %8 = vector.load %arg2[%c0_8, %c0_9] : memref<4x9xf32, #tpu.memory_space<vmem>>, vector<4x1xf32>
    %9 = vector.broadcast %8 : vector<4x1xf32> to vector<4x256xf32>
    %10 = arith.mulf %7, %9 : vector<4x256xf32>
    %c0_10 = arith.constant 0 : index
    %c127 = arith.constant 127 : index
    %11 = vector.load %arg8[%c0_10, %c127] : memref<4x512xf32, #tpu.memory_space<vmem>>, vector<4x256xf32>
    %c0_11 = arith.constant 0 : index
    %c3 = arith.constant 3 : index
    %12 = vector.load %arg2[%c0_11, %c3] : memref<4x9xf32, #tpu.memory_space<vmem>>, vector<4x1xf32>
    %13 = vector.broadcast %12 : vector<4x1xf32> to vector<4x256xf32>
    %14 = arith.mulf %11, %13 : vector<4x256xf32>
    %15 = arith.addf %10, %14 : vector<4x256xf32>
    %c0_12 = arith.constant 0 : index
    %c143 = arith.constant 143 : index
    %16 = vector.load %arg8[%c0_12, %c143] : memref<4x512xf32, #tpu.memory_space<vmem>>, vector<4x256xf32>
    %c0_13 = arith.constant 0 : index
    %c6 = arith.constant 6 : index
    %17 = vector.load %arg2[%c0_13, %c6] : memref<4x9xf32, #tpu.memory_space<vmem>>, vector<4x1xf32>
    %18 = vector.broadcast %17 : vector<4x1xf32> to vector<4x256xf32>
    %19 = arith.mulf %16, %18 : vector<4x256xf32>
    %20 = arith.addf %15, %19 : vector<4x256xf32>
    %c0_14 = arith.constant 0 : index
    %c0_15 = arith.constant 0 : index
    %21 = vector.load %arg6[%c0_14, %c0_15] : memref<2x256xf32, #tpu.memory_space<vmem>>, vector<1x256xf32>
    %22 = vector.broadcast %21 : vector<1x256xf32> to vector<4x256xf32>
    %23 = arith.mulf %20, %22 : vector<4x256xf32>
    %c0_16 = arith.constant 0 : index
    %c112 = arith.constant 112 : index
    %24 = vector.load %arg8[%c0_16, %c112] : memref<4x512xf32, #tpu.memory_space<vmem>>, vector<4x256xf32>
    %c0_17 = arith.constant 0 : index
    %c1 = arith.constant 1 : index
    %25 = vector.load %arg2[%c0_17, %c1] : memref<4x9xf32, #tpu.memory_space<vmem>>, vector<4x1xf32>
    %26 = vector.broadcast %25 : vector<4x1xf32> to vector<4x256xf32>
    %27 = arith.mulf %24, %26 : vector<4x256xf32>
    %c0_18 = arith.constant 0 : index
    %c128_19 = arith.constant 128 : index
    %28 = vector.load %arg8[%c0_18, %c128_19] : memref<4x512xf32, #tpu.memory_space<vmem>>, vector<4x256xf32>
    %c0_20 = arith.constant 0 : index
    %c4 = arith.constant 4 : index
    %29 = vector.load %arg2[%c0_20, %c4] : memref<4x9xf32, #tpu.memory_space<vmem>>, vector<4x1xf32>
    %30 = vector.broadcast %29 : vector<4x1xf32> to vector<4x256xf32>
    %31 = arith.mulf %28, %30 : vector<4x256xf32>
    %32 = arith.addf %27, %31 : vector<4x256xf32>
    %c0_21 = arith.constant 0 : index
    %c144 = arith.constant 144 : index
    %33 = vector.load %arg8[%c0_21, %c144] : memref<4x512xf32, #tpu.memory_space<vmem>>, vector<4x256xf32>
    %c0_22 = arith.constant 0 : index
    %c7 = arith.constant 7 : index
    %34 = vector.load %arg2[%c0_22, %c7] : memref<4x9xf32, #tpu.memory_space<vmem>>, vector<4x1xf32>
    %35 = vector.broadcast %34 : vector<4x1xf32> to vector<4x256xf32>
    %36 = arith.mulf %33, %35 : vector<4x256xf32>
    %37 = arith.addf %32, %36 : vector<4x256xf32>
    %38 = arith.addf %23, %37 : vector<4x256xf32>
    %c0_23 = arith.constant 0 : index
    %c113 = arith.constant 113 : index
    %39 = vector.load %arg8[%c0_23, %c113] : memref<4x512xf32, #tpu.memory_space<vmem>>, vector<4x256xf32>
    %c0_24 = arith.constant 0 : index
    %c2 = arith.constant 2 : index
    %40 = vector.load %arg2[%c0_24, %c2] : memref<4x9xf32, #tpu.memory_space<vmem>>, vector<4x1xf32>
    %41 = vector.broadcast %40 : vector<4x1xf32> to vector<4x256xf32>
    %42 = arith.mulf %39, %41 : vector<4x256xf32>
    %c0_25 = arith.constant 0 : index
    %c129 = arith.constant 129 : index
    %43 = vector.load %arg8[%c0_25, %c129] : memref<4x512xf32, #tpu.memory_space<vmem>>, vector<4x256xf32>
    %c0_26 = arith.constant 0 : index
    %c5 = arith.constant 5 : index
    %44 = vector.load %arg2[%c0_26, %c5] : memref<4x9xf32, #tpu.memory_space<vmem>>, vector<4x1xf32>
    %45 = vector.broadcast %44 : vector<4x1xf32> to vector<4x256xf32>
    %46 = arith.mulf %43, %45 : vector<4x256xf32>
    %47 = arith.addf %42, %46 : vector<4x256xf32>
    %c0_27 = arith.constant 0 : index
    %c145 = arith.constant 145 : index
    %48 = vector.load %arg8[%c0_27, %c145] : memref<4x512xf32, #tpu.memory_space<vmem>>, vector<4x256xf32>
    %c0_28 = arith.constant 0 : index
    %c8 = arith.constant 8 : index
    %49 = vector.load %arg2[%c0_28, %c8] : memref<4x9xf32, #tpu.memory_space<vmem>>, vector<4x1xf32>
    %50 = vector.broadcast %49 : vector<4x1xf32> to vector<4x256xf32>
    %51 = arith.mulf %48, %50 : vector<4x256xf32>
    %52 = arith.addf %47, %51 : vector<4x256xf32>
    %c1_29 = arith.constant 1 : index
    %c0_30 = arith.constant 0 : index
    %53 = vector.load %arg6[%c1_29, %c0_30] : memref<2x256xf32, #tpu.memory_space<vmem>>, vector<1x256xf32>
    %54 = vector.broadcast %53 : vector<1x256xf32> to vector<4x256xf32>
    %55 = arith.mulf %52, %54 : vector<4x256xf32>
    %56 = arith.addf %38, %55 : vector<4x256xf32>
    %c0_31 = arith.constant 0 : index
    %c0_32 = arith.constant 0 : index
    %57 = vector.load %arg3[%c0_31, %c0_32] : memref<4x1xf32, #tpu.memory_space<vmem>>, vector<4x1xf32>
    %58 = vector.broadcast %57 : vector<4x1xf32> to vector<4x256xf32>
    %59 = arith.addf %56, %58 : vector<4x256xf32>
    %60 = arith.negf %59 : vector<4x256xf32>
    %61 = math.exp %60 : vector<4x256xf32>
    %cst_33 = arith.constant 1.000000e+00 : f32
    %62 = vector.broadcast %cst_33 : f32 to vector<4x256xf32>
    %63 = arith.addf %62, %61 : vector<4x256xf32>
    %64 = arith.divf %62, %63 : vector<4x256xf32>
    %65 = arith.mulf %59, %64 : vector<4x256xf32>
    %c0_34 = arith.constant 0 : index
    %c0_35 = arith.constant 0 : index
    %66 = vector.load %arg4[%c0_34, %c0_35] : memref<8x4xf32, #tpu.memory_space<vmem>>, vector<8x4xf32>
    %cst_36 = arith.constant dense<0.000000e+00> : vector<8x256xf32>
    %67 = tpu.matmul %66, %65, %cst_36 {dimension_numbers = #tpu.dot_dimension_numbers<[1], [0], [0], [1], [0, 0, 1, 1], [], []>} : vector<8x4xf32>, vector<4x256xf32>, vector<8x256xf32> -> vector<8x256xf32>
    %c0_37 = arith.constant 0 : index
    %c0_38 = arith.constant 0 : index
    %68 = vector.load %arg5[%c0_37, %c0_38] : memref<8x1xf32, #tpu.memory_space<vmem>>, vector<8x1xf32>
    %69 = vector.broadcast %68 : vector<8x1xf32> to vector<8x256xf32>
    %70 = arith.addf %67, %69 : vector<8x256xf32>
    %71 = arith.negf %70 : vector<8x256xf32>
    %72 = math.exp %71 : vector<8x256xf32>
    %cst_39 = arith.constant 1.000000e+00 : f32
    %73 = vector.broadcast %cst_39 : f32 to vector<8x256xf32>
    %74 = arith.addf %73, %72 : vector<8x256xf32>
    %75 = arith.divf %73, %74 : vector<8x256xf32>
    %76 = arith.mulf %70, %75 : vector<8x256xf32>
    %c0_40 = arith.constant 0 : index
    %c0_41 = arith.constant 0 : index
    %c0_42 = arith.constant 0 : index
    %77 = vector.load %arg7[%c0_40, %c0_41, %c0_42] : memref<1x8x256xf32, #tpu.memory_space<vmem>>, vector<1x8x256xf32>
    %78 = vector.shape_cast %77 : vector<1x8x256xf32> to vector<8x256xf32>
    %79 = vector.shape_cast %76 : vector<8x256xf32> to vector<1x8x256xf32>
    tpu.vector_store %arg7[%c0_40, %c0_41, %c0_42], %79 {strides = array<i32>} : memref<1x8x256xf32, #tpu.memory_space<vmem>>, vector<1x8x256xf32>,
    return
  }
  func.func @transform_0(%arg0: i32) -> (i32, i32, i32) {
    %c0_i32 = arith.constant 0 : i32
    %c0_i32_0 = arith.constant 0 : i32
    %c0_i32_1 = arith.constant 0 : i32
    return %arg0, %c0_i32, %c0_i32_0 : i32, i32, i32
  }
  func.func @transform_1(%arg0: i32) -> (i32, i32) {
    %c0_i32 = arith.constant 0 : i32
    %c0_i32_0 = arith.constant 0 : i32
    %c0_i32_1 = arith.constant 0 : i32
    return %c0_i32, %c0_i32_0 : i32, i32
  }
  func.func @transform_2(%arg0: i32) -> (i32, i32) {
    %c0_i32 = arith.constant 0 : i32
    %c0_i32_0 = arith.constant 0 : i32
    %c0_i32_1 = arith.constant 0 : i32
    return %c0_i32, %c0_i32_0 : i32, i32
  }
  func.func @transform_3(%arg0: i32) -> (i32, i32) {
    %c0_i32 = arith.constant 0 : i32
    %c0_i32_0 = arith.constant 0 : i32
    %c0_i32_1 = arith.constant 0 : i32
    return %c0_i32, %c0_i32_0 : i32, i32
  }
  func.func @transform_4(%arg0: i32) -> (i32, i32) {
    %c0_i32 = arith.constant 0 : i32
    %c0_i32_0 = arith.constant 0 : i32
    %c0_i32_1 = arith.constant 0 : i32
    return %c0_i32, %c0_i32_0 : i32, i32
  }
  func.func @transform_5(%arg0: i32) -> (i32, i32) {
    %c0_i32 = arith.constant 0 : i32
    %c0_i32_0 = arith.constant 0 : i32
    %c0_i32_1 = arith.constant 0 : i32
    return %c0_i32, %c0_i32_0 : i32, i32
  }
  func.func @transform_6(%arg0: i32) -> (i32, i32, i32) {
    %c0_i32 = arith.constant 0 : i32
    %c0_i32_0 = arith.constant 0 : i32
    %c0_i32_1 = arith.constant 0 : i32
    return %arg0, %c0_i32, %c0_i32_0 : i32, i32, i32
  }
}

</mosaic_0001>

<bundles_post_ra>
// kernel: tpu_custom_call.1
= control target key start
LH: loop header
LB: loop body
LE: loop exit
PB: predicated region body
PF: predicated region fallthrough
CT: control target
= control target key end

     0   :  { %11 = vsyncpa [#allocation4], 0  ;;  %s1149_s0 = inlined_call_operand.vmem [shape: f32[2,4,256], index: 0, kind: input, shape index: {}]   ;;  %s1150_s1 = inlined_call_operand.vmem [shape: f32[4,9], index: 1, kind: input, shape index: {}]   ;;  %s1151_s2 = inlined_call_operand.vmem [shape: f32[4,1], index: 2, kind: input, shape index: {}]   ;;  %s1152_s3 = inlined_call_operand.vmem [shape: f32[8,4], index: 3, kind: input, shape index: {}]   ;;  %s1153_s4 = inlined_call_operand.vmem [shape: f32[8,1], index: 4, kind: input, shape index: {}]   ;;  %s1154_s5 = inlined_call_operand.vmem [shape: f32[2,256], index: 5, kind: input, shape index: {}]   ;;  %s1155_s6 = inlined_call_operand.hbm [shape: f32[2,8,256], index: 6, kind: output, shape index: {}]  }
   0x1   :  { %13 = vsyncpa [#allocation4 + $0x1], 0  ;;  %s972_s21 = smov 0   ;;  %s974_s22 = smov 0  }
   0x2   :  { %s976_s23 = smov 0   ;;  %s978_s24 = smov 0  }
   0x3 LB: > { %s993_s25 = sadd.s32 4294967295, %s916_s24   ;;  %s749_s26 = sadd.s32 4294967294, %s916_s24   ;;  %s916_s24 = sphi %s978_s24, %s1161_s24   ;;  %s912_s23 = sphi %s976_s23, %s1160_s23   ;;  %s908_s22 = sphi %s974_s22, %s1159_s22   ;;  %s904_s21 = sphi %s972_s21, %s1158_s21  }
   0x4   : > { %s997_s27 = sadd.s32 1, %s916_s24   ;;  %s157_s28 = sadd.s32 1, %s912_s23 }
   0x5   : > { %s154_s29 = ssub.s32 %s916_s24, %s997_s27  ;;  %p167_p0 = scmp.ne.s32.totalorder %s912_s23, %s908_s22 }
   0x6   : > { %p155_p1 = scmp.eq.s32.totalorder %s154_s29, 0  ;;  %p168_p2 = scmp.eq.s32.totalorder %s993_s25, 1 }
   0x7   : > { %p173_p3 = scmp.ne.s32.totalorder %s908_s22, %s904_s21  ;;  %p174_p4 = scmp.eq.s32.totalorder %s749_s26, 1 }
   0x8   : > { %s1008_s30 = scalar_select %p155_p1, %s912_s23, %s157_s28  }
   0x9   : > { %p1010_p5 = por %p168_p2, %p167_p0  ;;  %p1014_p6 = por %p174_p4, %p173_p3 }
   0xa   : > { %p752_p7 = scmp.ge.s32.totalorder %s916_s24, 1  ;;  %p215_p8 = scmp.lt.s32.totalorder %s916_s24, 3 }
   0xc   : > { %p216_p9 = pnand %p752_p7, %p215_p8 }
   0xd   : > { %v351_v0 = vld [vmem:[%s1150_s1] sm:$0xf] (!%p216_p9)  ;;  %v918_v1 = vmov (!%p216_p9), 4   ;;  %v919_v2 = vmov (!%p216_p9), 7   ;;  %p245_p10 = scmp.lt.s32.totalorder (!%p216_p9), %s993_s25, 1  ;;  %v920_v3 = vmov (!%p216_p9), 0.0   ;;  %v264_v15 = vlaneseq (!%p216_p9) }
   0xe   : > { %219 = sbr.rel (%p216_p9) target bundleno = 815 (0x32f), region = 44  ;;  %828 = vset.pattern.permute.xlu0 (!%p216_p9), %v918_v1  ;;  %830 = vset.pattern.permute.xlu1 (!%p216_p9), %v919_v2  ;;  %251 = vst [vmem:[#allocation2 + $0xc] sm:$0xf] (!%p216_p9), %v920_v3  ;;  %250 = vst [vmem:[#allocation2] sm:$0xf] (!%p216_p9), %v920_v3  ;;  %v921_v4 = vmov (!%p216_p9), 5  }
   0xf   : > { %368 = vperm.xlu0 (!%p216_p9), %828, %v351_v0   ;;  %391 = vperm.xlu1 (!%p216_p9), %830, %v351_v0   ;;  %v922_v5 = vmov (!%p216_p9), 8   ;;  %v256_v7 = vld [vmem:[%s1150_s1] sm:$0xf] (!%p216_p9)  ;;  %v923_v8 = vmov (!%p216_p9), 3   ;;  %v924_v9 = vmov (!%p216_p9), 1   ;;  %v925_v10 = vmov (!%p216_p9), 2  }
  0x10   : > { %652 = vmatprep.mubr.f32.mxu0 (!%p216_p9), %v920_v3  ;;  %v926_v11 = vmov (!%p216_p9), 6   ;;  %v927_v12 = vmov (!%p216_p9), 0   ;;  %v928_v13 = vmov (!%p216_p9), 839922192   ;;  %v265_v17 = vshrl.u32 (!%p216_p9), %v264_v15, 7  ;;  %s929_s18 = smov (!%p216_p9), 112  }
  0x11   : > { %v262_v14 = vunpack.c.l.s4 (!%p216_p9), %v928_v13  ;;  %s930_s19 = smov (!%p216_p9), 96   ;;  %v756_v35 = vld [vmem:[%s1154_s5 + $0x1] ss:$2 sm:$0x3] (!%p216_p9)  ;;  %s931_s9 = smov (!%p216_p9), 113   ;;  %vm294_vm0 = vcmask (!%p216_p9), 916480  }
  0x12   : > { %v333_v32 = vsub.s32 (!%p216_p9), 0, %v265_v17  ;;  %v337_v33 = vsub.s32 (!%p216_p9), 1, %v265_v17  ;;  %v329_v40 = vld [vmem:[%s1154_s5] ss:$2 sm:$0x3] (!%p216_p9)  ;;  %vm322_vm1 = vcmask (!%p216_p9), 785408  }
  0x13   : > { %829 = vset.pattern.permute.xlu0 (!%p216_p9), %v921_v4  ;;  %831 = vset.pattern.permute.xlu1 (!%p216_p9), %v922_v5  ;;  %v263_v16 = vunpack.c.0.s8 (!%p216_p9), %v262_v14  ;;  %v532_v48 = vld [vmem:[%s1151_s2] sm:$0xf] (!%p216_p9)  ;;  %s933_s13 = smov (!%p216_p9), 127   ;;  %vm511_vm2 = vcmask (!%p216_p9), 924672   ;;  %s934_s14 = smov (!%p216_p9), 126   ;;  %vm292_vm3 = vcmask (!%p216_p9), 1043456  }
  0x14   : > { %445 = vperm.xlu0 (!%p216_p9), %829, %v351_v0   ;;  %471 = vperm.xlu1 (!%p216_p9), %831, %v351_v0   ;;  %v502_v38 = vrot.slane (!%p216_p9), %v756_v35, %v333_v32  ;;  %v506_v39 = vrot.slane (!%p216_p9), %v756_v35, %v337_v33  ;;  %v334_v44 = vrot.slane (!%p216_p9), %v329_v40, %v333_v32  ;;  %vm343_vm4 = vcmask (!%p216_p9), 908288   ;;  %s242_s20 = sand.u32 (!%p216_p9), 1, %s908_s22   ;;  %s770_s28 = sshll.u32 (!%p216_p9), %s993_s25, 8 }
  0x15   : > { %s246_s11 = scalar_select %p245_p10, %s993_s25, 1  ;;  %v1034_v18 = vsub.s32 %v263_v16, %v265_v17  ;;  %v389_v30 = vld [vmem:[#allocation2 + $0xc] sm:$0xf]  ;;  %v338_v45 = vrot.slane %v329_v40, %v337_v33  ;;  %vm425_vm5 = vcmask 1039360   ;;  %vm526_vm6 = vcmask 1031168  }
  0x16   : > { %v507_v43 = vcombine.low %v502_v38, %v506_v39  ;;  %v301_v56 = vld [vmem:[#allocation2 + $0xc] sm:$0xf]  ;;  %vm577_vm7 = vcmask 138240   ;;  %vm580_vm8 = vcmask 31744   ;;  %s753_s26 = sshll.u32 %s242_s20, 4 }
  0x17   : > { %s769_s12 = sshll.u32 %s246_s11, 3  ;;  %v339_v50 = vcombine.low %v334_v44, %v338_v45  ;;  %s244_s29 = scalar_lea.vmem [#allocation3], %s753_s26 }
  0x18   : > { %s249_s15 = scalar_lea.vmem %s1149_s0, %s769_s12  ;;  %832 = vset.pattern.permute.xlu1 %v923_v8  ;;  %833 = vset.pattern.permute.xlu0 %v924_v9  ;;  %s932_s12 = smov 111  }
  0x19   : > { %v1028_v6 = vld [vmem:[%s249_s15] sm:$0xff]  ;;  %272 = vperm.xlu1 %832, %v256_v7   ;;  %354 = vperm.xlu0 %833, %v351_v0   ;;  %s935_s15 = smov 17  }
  0x1a   : > { %253 = vst [vmem:[#allocation2 + $0x4] sm:$0xff] %v1028_v6 }
  0x1d   : > { %834 = vset.pattern.permute.xlu1 %v925_v10  ;;  %836 = vset.pattern.permute.xlu0 %v927_v12 }
  0x1e   : > { %432 = vperm.xlu1 %834, %v351_v0  }
  0x21   : > { %v1062_v51 = vld [vmem:[#allocation2] sm:$0xff]  ;;  %v1066_v54 = vld [vmem:[#allocation2 + $0x8] sm:$0xf] }
  0x22   : > { %835 = vset.pattern.permute.xlu1 %v926_v11  ;;  %v350_v5 = vld [vmem:[#allocation2 + $0x8] sm:$0xf] }
  0x23   : > { %303 = vperm.xlu1 %835, %v256_v7  }
  0x27   : > { %837 = vset.pattern.permute.xlu1 %v927_v12 }
  0x8e   : > { %v369_v19 = vpop.permute.xlu0 %368  ;;  %v392_v20 = vpop.permute.xlu1 %391 }
  0x8f   : > { %v376_v21 = vrot.slane %v369_v19, %v1034_v18  ;;  %v399_v22 = vrot.slane %v392_v20, %v1034_v18 }
  0x91   : > { %v378_v23 = vmul.f32 %v376_v21, %v1028_v6  ;;  %v401_v24 = vmul.f32 %v399_v22, %v1028_v6  ;;  %v402_v42 = vmul.f32 %v399_v22, %v389_v30 }
  0x93   : > { %v446_v25 = vpop.permute.xlu0 %445  ;;  %380 = vrot.lane.b32.xlu0 %v378_v23, %s929_s18  ;;  %v472_v26 = vpop.permute.xlu1 %471 }
  0x94   : > { %v453_v27 = vrot.slane %v446_v25, %v1034_v18  ;;  %v479_v28 = vrot.slane %v472_v26, %v1034_v18 }
  0x96   : > { %v455_v29 = vmul.f32 %v453_v27, %v1028_v6  ;;  %v481_v31 = vmul.f32 %v479_v28, %v1028_v6  ;;  %v456_v36 = vmul.f32 %v453_v27, %v389_v30  ;;  %v482_v37 = vmul.f32 %v479_v28, %v389_v30 }
  0x97   : > { %405 = vrot.lane.b32.xlu0 %v401_v24, %s930_s19 }
  0x98   : > { %459 = vrot.lane.b32.xlu1 %v455_v29, %s929_s18  ;;  %v273_v34 = vpop.permute.xlu1 %272  ;;  %v355_v58 = vpop.permute.xlu0 %354 }
  0x99   : > { %v280_v49 = vrot.slane %v273_v34, %v1034_v18  ;;  %v362_v59 = vrot.slane %v355_v58, %v1034_v18 }
  0x9b   : > { %485 = vrot.lane.b32.xlu0 %v481_v31, %s930_s19  ;;  %v282_v53 = vmul.f32 %v280_v49, %v1062_v51  ;;  %v283_v55 = vmul.f32 %v280_v49, %v1066_v54  ;;  %v364_v62 = vmul.f32 %v362_v59, %v1062_v51  ;;  %v365_v10 = vmul.f32 %v362_v59, %v350_v5 }
  0x9c   : > { %461 = vrot.lane.b32.xlu1 %v456_v36, %s929_s18 }
  0x9d   : > { %v433_v41 = vpop.permute.xlu1 %432 }
  0x9f   : > { %487 = vrot.lane.b32.xlu0 %v482_v37, %s930_s19 }
  0xa0   : > { %407 = vrot.lane.b32.xlu1 %v402_v42, %s930_s19 }
  0xa2   : > { %v304_v46 = vpop.permute.xlu1 %303 }
  0xa3   : > { %259 = vperm.xlu0 %836, %v256_v7   ;;  %v311_v47 = vrot.slane %v304_v46, %v1034_v18 }
  0xa4   : > { %508 = vrot.lane.b32.xlu1 %v507_v43, %s931_s9  ;;  %s690_s9 = sshll.u32 %s244_s29, 4  ;;  %s1109_s9 = int_to_ptr.vmem [resolvable:$true] %s690_s9 }
  0xa5   : > { %v313_v52 = vmul.f32 %v311_v47, %v1028_v6  ;;  %v314_v57 = vmul.f32 %v311_v47, %v301_v56  ;;  %v440_v6 = vrot.slane %v433_v41, %v1034_v18  ;;  %s854_s25 = scalar_lea.vmem %s1109_s9, 256 }
  0xa6   : > { %p855_p11 = scmp.ne.s32.totalorder %s1109_s9, %s854_s25 }
  0xa7   : > { %535 = vperm.xlu0 %836, %v532_v48   ;;  %v443_v13 = vmul.f32 %v440_v6, %v350_v5  ;;  %v442_v17 = vmul.f32 %v440_v6, %v1062_v51 }
  0xa8   : > { %340 = vrot.lane.b32.xlu1 %v339_v50, %s932_s12  ;;  %s1107_s12 = scalar_lea.hbm %s1155_s6, %s770_s28  ;;  %p856_p12 = pnand %p855_p11, %p1010_p5 }
  0xaa   : > { %p857_p13 = pneg %p856_p12 }
  0xab   : > { %317 = vrot.lane.b32.xlu0 %v313_v52, %s930_s19 }
  0xac   : > { %286 = vrot.lane.b32.xlu1 %v282_v53, %s929_s18 }
  0xb0   : > { %288 = vrot.lane.b32.xlu1 %v283_v55, %s929_s18 }
  0xb4   : > { %319 = vrot.lane.b32.xlu1 %v314_v57, %s930_s19 }
 0x105   : > { %v381_v60 = vpop.permute.xlu0 %380 }
 0x106   : > { %v382_v61 = vrot.slane %v381_v60, 4 }
 0x108   : > { %v383_v63 = vsel %vm294_vm0, %v382_v61, %v381_v60  ;;  %v387_v19 = vadd.f32 %v382_v61, %v365_v10 }
 0x109   : > { %v406_v0 = vpop.permute.xlu0 %405  ;;  %v386_v3 = vadd.f32 %v383_v63, %v364_v62 }
 0x10a   : > { %v409_v1 = vrot.slane %v406_v0, 4  ;;  %v460_v2 = vpop.permute.xlu1 %459 }
 0x10b   : > { %v463_v8 = vrot.slane %v460_v2, 4 }
 0x10c   : > { %v410_v4 = vsel %vm322_vm1, %v409_v1, %v406_v0 }
 0x10d   : > { %v414_v7 = vadd.f32 %v410_v4, %v386_v3  ;;  %v486_v9 = vpop.permute.xlu0 %485  ;;  %v464_v14 = vsel %vm294_vm0, %v463_v8, %v460_v2 }
 0x10e   : > { %v462_v11 = vpop.permute.xlu1 %461  ;;  %v489_v15 = vrot.slane %v486_v9, 4  ;;  %v468_v23 = vadd.f32 %v464_v14, %v442_v17 }
 0x10f   : > { %418 = vrot.lane.b32.xlu1 %v414_v7, %s933_s13  ;;  %v465_v12 = vsel %vm294_vm0, %v463_v8, %v462_v11 }
 0x110   : > { %v469_v21 = vadd.f32 %v465_v12, %v443_v13  ;;  %v490_v26 = vsel %vm322_vm1, %v489_v15, %v486_v9 }
 0x111   : > { %v488_v16 = vpop.permute.xlu0 %487  ;;  %v494_v30 = vadd.f32 %v490_v26, %v468_v23 }
 0x112   : > { %v408_v20 = vpop.permute.xlu1 %407  ;;  %v491_v24 = vsel %vm322_vm1, %v489_v15, %v488_v16 }
 0x113   : > { %v411_v22 = vsel %vm322_vm1, %v409_v1, %v408_v20  ;;  %v495_v28 = vadd.f32 %v491_v24, %v469_v21 }
 0x114   : > { %v415_v25 = vadd.f32 %v411_v22, %v387_v19  ;;  %v562_v22 = vld [vmem:[%s1153_s4] sm:$0xff] }
 0x116   : > { %v509_v27 = vpop.permute.xlu1 %508  ;;  %420 = vrot.lane.b32.xlu0 %v415_v25, %s933_s13  ;;  %s676_s13 = scalar_lea.sflag [#allocation4], %s242_s20 }
 0x117   : > { %v510_v29 = vrot.slane %v509_v27, 4 }
 0x119   : > { %v512_v31 = vsel %vm511_vm2, %v510_v29, %v509_v27  ;;  %v516_v32 = vmul.f32 %v510_v29, %v495_v28 }
 0x11a   : > { %v515_v33 = vmul.f32 %v512_v31, %v494_v30  ;;  %v341_v34 = vpop.permute.xlu1 %340  ;;  %v561_v30 = vld [vmem:[%s1152_s3] sm:$0xff] }
 0x11b   : > { %521 = vrot.lane.b32.xlu1 %v516_v32, %s934_s14  ;;  %v342_v56 = vrot.slane %v341_v34, 4 }
 0x11c   : > { %519 = vrot.lane.b32.xlu0 %v515_v33, %s934_s14  ;;  %s936_s14 = smov [#allocation3]  }
 0x11d   : > { %v344_v63 = vsel %vm343_vm4, %v342_v56, %v341_v34 }
 0x11e   : > { %v287_v35 = vpop.permute.xlu1 %286 }
 0x11f   : > { %v290_v36 = vrot.slane %v287_v35, 4 }
 0x122   : > { %v260_v37 = vpop.permute.xlu0 %259  ;;  %v289_v38 = vpop.permute.xlu1 %288 }
 0x123   : > { %v267_v39 = vrot.slane %v260_v37, %v1034_v18  ;;  %v291_v40 = vrot.slane %v289_v38, 4 }
 0x125   : > { %v293_v41 = vsel %vm292_vm3, %v290_v36, %v291_v40  ;;  %v269_v42 = vmul.f32 %v267_v39, %v1062_v51  ;;  %v270_v50 = vmul.f32 %v267_v39, %v1066_v54 }
 0x126   : > { %v536_v43 = vpop.permute.xlu0 %535  ;;  %v295_v44 = vsel %vm294_vm0, %v287_v35, %v293_v41  ;;  %v320_v52 = vpop.permute.xlu1 %319 }
 0x127   : > { %v298_v46 = vadd.f32 %v295_v44, %v269_v42  ;;  %v299_v53 = vadd.f32 %v289_v38, %v270_v50  ;;  %v543_v54 = vrot.slane %v536_v43, %v1034_v18 }
 0x12a   : > { %v318_v45 = vpop.permute.xlu0 %317 }
 0x12b   : > { %v321_v47 = vrot.slane %v318_v45, 4 }
 0x12d   : > { %v323_v48 = vsel %vm322_vm1, %v321_v47, %v318_v45  ;;  %v324_v55 = vsel %vm322_vm1, %v321_v47, %v320_v52 }
 0x12e   : > { %v327_v49 = vadd.f32 %v323_v48, %v298_v46  ;;  %v328_v57 = vadd.f32 %v324_v55, %v299_v53 }
 0x130   : > { %v348_v61 = vmul.f32 %v342_v56, %v328_v57  ;;  %v347_v6 = vmul.f32 %v344_v63, %v327_v49 }
 0x181   : > { %v419_v58 = vpop.permute.xlu1 %418 }
 0x182   : > { %v422_v51 = vrot.slane %v419_v58, 4 }
 0x188   : > { %v421_v59 = vpop.permute.xlu0 %420 }
 0x189   : > { %v423_v60 = vrot.slane %v421_v59, 4  ;;  %v430_v0 = vadd.f32 %v421_v59, %v348_v61 }
 0x18b   : > { %v424_v62 = vsel %vm292_vm3, %v422_v51, %v423_v60 }
 0x18c   : > { %v426_v5 = vsel %vm425_vm5, %v419_v58, %v424_v62 }
 0x18d   : > { %v522_v1 = vpop.permute.xlu1 %521  ;;  %v429_v9 = vadd.f32 %v426_v5, %v347_v6 }
 0x18e   : > { %v524_v2 = vrot.slane %v522_v1, 4  ;;  %v531_v3 = vadd.f32 %v522_v1, %v430_v0  ;;  %v520_v4 = vpop.permute.xlu0 %519 }
 0x18f   : > { %v523_v7 = vrot.slane %v520_v4, 4 }
 0x190   : > { %v546_v8 = vadd.f32 %v543_v54, %v531_v3 }
 0x191   : > { %v525_v10 = vsel %vm292_vm3, %v523_v7, %v524_v2 }
 0x192   : > { %v758_v11 = vmul.f32 -1.442695, %v546_v8  ;;  %v527_v12 = vsel %vm526_vm6, %v520_v4, %v525_v10 }
 0x193   : > { %v530_v13 = vadd.f32 %v527_v12, %v429_v9 }
 0x194   : > { %838 = vpow2.f32 %v758_v11 }
 0x195   : > { %v545_v14 = vadd.f32 %v543_v54, %v530_v13 }
 0x197   : > { %v757_v15 = vmul.f32 -1.442695, %v545_v14 }
 0x199   : > { %840 = vpow2.f32 %v757_v15 }
 0x19e   : > { %v839_v16 = vpop.eup %838 }
 0x19f   : > { %v554_v18 = vadd.f32 1.0, %v839_v16 }
 0x1a1   : > { %842 = vrcp.f32 %v554_v18 }
 0x1a3   : > { %v841_v17 = vpop.eup %840 }
 0x1a4   : > { %v553_v19 = vadd.f32 1.0, %v841_v17 }
 0x1a6   : > { %844 = vrcp.f32 %v553_v19 }
 0x1ab   : > { %v843_v20 = vpop.eup %842 }
 0x1ac   : > { %v560_v21 = vmul.f32 %v843_v20, %v546_v8 }
 0x1ae   : > { %575 = vrot.lane.b32.xlu1 %v560_v21, %s935_s15 }
 0x1b0   : > { %v845_v23 = vpop.eup %844 }
 0x1b1   : > { %v559_v24 = vmul.f32 %v845_v23, %v545_v14 }
 0x1b2   : > { %565 = vperm.xlu1 %837, %v562_v22  }
 0x1b3   : > { %v570_v25 = vcombine.high %v559_v24, %v559_v24 }
 0x1b5   : > { %573 = vrot.lane.b32.xlu0 %v570_v25, %s935_s15 }
 0x1b9   : > { %571 = vrot.lane.b32.xlu0 %v559_v24, %s935_s15  ;;  %s858_s15 = sshll.u32 %s936_s14, 4  ;;  %s859_s15 = int_to_ptr.vmem [resolvable:$false] %s858_s15 }
 0x1ba   : > { %s860_s16 = scalar_lea.vmem %s859_s15, 512  ;;  %p861_p0 = scmp.lt.s32.totalorder %s1109_s9, %s859_s15 }
 0x1bb   : > { %p862_p1 = scmp.lt.s32.totalorder %s860_s16, %s854_s25 }
 0x1bd   : > { %p863_p2 = por %p862_p1, %p861_p0 }
 0x1bf   : > { %p864_p3 = pnand %p863_p2, %p857_p13 }
 0x220   : > { %v576_v26 = vpop.permute.xlu1 %575 }
 0x227   : > { %v574_v27 = vpop.permute.xlu0 %573 }
 0x228   : > { %v579_v28 = vsel %vm577_vm7, %v574_v27, %v576_v26 }
 0x229   : > { %759 = vmatprep.subr.msk.mxu0 %vm292_vm3, %v579_v28 }
 0x22b   : > { %v572_v29 = vpop.permute.xlu0 %571 }
 0x22c   : > { %v578_v31 = vsel %vm577_vm7, %v572_v29, %v574_v27 }
 0x22d   : > { %760 = vmatpush1.msk.msra.mxu0 %vm292_vm3, %v578_v31 }
 0x22e   : > { %761 = vmatmul.mubr.msk.f32.vlgmr.msra.gmra.mrb[0].mxu0 %vm580_vm8, %v561_v30 }
 0x231   : > { %v566_v32 = vpop.permute.xlu1 %565 }
 0x301   : > { %v654_v33 = vpop.f32.mrb[0].mxu0 }
 0x302   : > { %v655_v34 = vadd.f32 %v654_v33, %v566_v32  ;;  %v656_v35 = vpop.f32.mrb[1].mxu0 }
 0x303   : > { %v657_v36 = vadd.f32 %v656_v35, %v566_v32 }
 0x304   : > { %v762_v37 = vmul.f32 -1.442695, %v655_v34 }
 0x305   : > { %v763_v38 = vmul.f32 -1.442695, %v657_v36 }
 0x306   : > { %846 = vpow2.f32 %v762_v37 }
 0x307   : > { %848 = vpow2.f32 %v763_v38 }
 0x310   : > { %v847_v39 = vpop.eup %846 }
 0x311   : > { %v849_v40 = vpop.eup %848  ;;  %v665_v41 = vadd.f32 1.0, %v847_v39 }
 0x312   : > { %v666_v42 = vadd.f32 1.0, %v849_v40 }
 0x313   : > { %850 = vrcp.f32 %v665_v41 }
 0x314   : > { %852 = vrcp.f32 %v666_v42 }
 0x31d   : > { %v851_v43 = vpop.eup %850 }
 0x31e   : > { %v853_v44 = vpop.eup %852  ;;  %v671_v45 = vmul.f32 %v851_v43, %v655_v34 }
 0x31f   : > { %v672_v46 = vmul.f32 %v853_v44, %v657_v36 }
 0x320   : > { %673 = vst [vmem:[%s244_s29] sm:$0xff] %v671_v45 }
 0x321   : > { %674 = vst [vmem:[%s244_s29 + $0x8] sm:$0xff] %v672_v46 }
 0x322   : > { %867 = shalt.err (!%p864_p3)
}
 0x323   : > { %s868_s17 = scalar_lea.hbm %s1107_s12, 256  ;;  %s872_s20 = scalar_lea.hbm %s1155_s6, 512 }
 0x324   : > { %p869_p4 = scmp.ne.s32.totalorder %s1107_s12, %s868_s17  ;;  %p873_p9 = scmp.lt.u32.totalorder %s1107_s12, %s1155_s6 }
 0x325   : > { %p874_p10 = scmp.lt.u32.totalorder %s872_s20, %s868_s17  ;;  %p876_p12 = scmp.lt.u32.totalorder %s868_s17, %s1107_s12 }
 0x326   : > { %p870_p7 = pnand %p869_p4, %p1010_p5 }
 0x327   : > { %p875_p11 = por %p874_p10, %p873_p9 }
 0x328   : > { %p871_p8 = pneg %p870_p7 }
 0x329   : > { %p877_p13 = por %p876_p12, %p875_p11 }
 0x32b   : > { %p878_p0 = pnand %p877_p13, %p871_p8 }
 0x32d   : > { %881 = shalt.err (!%p878_p0)
}
 0x32e   : > { %771 = dma.vmem_to_hbm [thread:$0]  (%p1010_p5), %s1109_s9, 256, %s1107_s12, %s676_s13  }
 0x32f PF: > { %p777_p1 = scmp.ge.s32.totalorder %s916_s24, 2  ;;  %s702_s29 = sand.u32 1, %s904_s21  }
 0x330   : > { %s703_s10 = scalar_lea.sflag [#allocation4], %s702_s29 }
 0x331   : > { %p774_p2 = pnand %p777_p1, %p1014_p6 }
 0x333   : > { %899 = dma.done.wait (!%p774_p2), %s703_s10, 256  }
 0x334   : > { %901 = vsyncadd (!%p774_p2), %s703_s10, 4294967040  ;;  %p16_p3 = scmp.ge.s32.totalorder %s997_s27, 4   ;;  %s1158_s21 = smov %s908_s22 }
 0x335   : > { %s1159_s22 = smov %s912_s23  ;;  %s1160_s23 = smov %s1008_s30 }
 0x336   : > { %s1161_s24 = smov %s997_s27  ;;  %18 = sbr.rel (!%p16_p3) target bundleno = 3 (0x3), region = 80 }
 0x33d   :  { %708 = vsyncpa [#allocation4], 1 }
 0x33e   :  { %710 = vsyncpa [#allocation4 + $0x1], 1 }

</bundles_post_ra>
